<compile_context>
chip_gen: v7x
topology: tpu7x:2x2x1
jax: 0.10.0
libtpu: 0.0.40
codegen_flags: <defaults>
</compile_context>

<pallas_src>
import jax
import jax.numpy as jnp
from jax import lax
from jax.experimental import pallas as pl
from jax.experimental.pallas import tpu as pltpu

BN_EPS = 1e-5
LANES = 128


def _round_up(x, m):
    return ((x + m - 1) // m) * m


def _pick_tile_ph(ph, target=8):
    """Largest divisor of the pooled height that is <= target (rows per grid step)."""
    t = min(ph, target)
    while ph % t:
        t -= 1
    return t


# ----------------------------- fused Pallas kernel ---------------------------

def _make_stem_kernel(n_conv_rows, tile_ph, pw, cp):
    """conv-GEMM + BN + ReLU + 3x3/s2 maxpool for one (batch, pooled-row-tile) step.

    p_ref:   (n_conv_rows, 2*pw, KP) bf16  haloed im2col patches.  Per conv row the
             2*pw patch rows are ordered [even output cols | odd output cols] so the
             stride-2 column pool becomes contiguous slices.
    w_ref:   (KP, cp) bf16 conv weight as GEMM (zero-padded K and out-channels).
    scale/shift: (1, cp) f32 folded BatchNorm.
    o_ref:   (tile_ph, pw, cp) f32 pooled output tile (lane-dense, cp = 128).
    """
    def kernel(p_ref, w_ref, scale_ref, shift_ref, o_ref):
        w = w_ref[...]
        scale = scale_ref[...]
        shift = shift_ref[...]
        t = pl.program_id(1)

        # conv + BN + ReLU; one MXU matmul per (haloed) conv output row.
        acts = []
        for l in range(n_conv_rows):
            a = jnp.dot(p_ref[l], w, preferred_element_type=jnp.float32)
            a = jnp.maximum(a * scale + shift, 0.0)
            if l == 0:
                # The top halo row is maxpool padding on the first row tile.
                # 0 is neutral for the max because post-ReLU activations >= 0.
                a = a * jnp.where(t > 0, 1.0, 0.0)
            acts.append(a)

        col_iota = lax.broadcasted_iota(jnp.int32, (pw, cp), 0)
        for pr in range(tile_ph):
            # max over the 3 conv rows feeding pooled row `pr` (stride 2, pad above).
            rmax = jnp.maximum(jnp.maximum(acts[2 * pr], acts[2 * pr + 1]),
                               acts[2 * pr + 2])              # (2*pw, cp)
            c_even = rmax[:pw]                                # conv cols 2q
            c_odd = rmax[pw:]                                 # conv cols 2q+1
            # conv cols 2q-1: odd columns shifted down by one; q == 0 is pool padding.
            c_left = jnp.where(col_iota == 0, 0.0, rmax[pw - 1:2 * pw - 1])
            o_ref[pr] = jnp.maximum(jnp.maximum(c_left, c_even), c_odd)

    return kernel


# ----------------------------- wrapper-side layout ---------------------------

def _build_patch_tiles(x_nhwc, kp, pool_row_tile_target=8):
    """im2col for conv1 (7x7/s2/p3), laid out per pooled-row tile with a one-conv-row
    top halo so the 3x3/s2 maxpool can be fused into the conv kernel."""
    B, H, W, C = x_nhwc.shape
    KH = KW = 7
    S, P = 2, 3
    OH = (H + 2 * P - KH) // S + 1
    OW = (W + 2 * P - KW) // S + 1
    assert OH % 2 == 0 and OW % 2 == 0, "TODO(synk): odd conv output sizes unsupported"
    PH, PW = OH // 2, OW // 2
    K = C * KH * KW

    xp = jnp.pad(x_nhwc, ((0, 0), (P, P), (P, P), (0, 0)))
    cols = []
    for ki in range(KH):
        for kj in range(KW):
            win = lax.slice(xp, (0, ki, kj, 0),
                            (B, ki + S * (OH - 1) + 1, kj + S * (OW - 1) + 1, C),
                            (1, S, S, 1))                     # (B, OH, OW, C)
            cols.append(win)
    pat = jnp.stack(cols, axis=3)                             # (B, OH, OW, KK, C)
    pat = jnp.transpose(pat, (0, 1, 2, 4, 3))                 # (B, OH, OW, C, KK)
    pat = pat.reshape(B, OH, OW, K)                           # K ordered (C,kh,kw) = torch OIHW

    # De-interleave conv output columns (even first, then odd) for the stride-2 pool.
    pat = pat.reshape(B, OH, PW, 2, K)
    pat = jnp.transpose(pat, (0, 1, 3, 2, 4)).reshape(B, OH, 2 * PW, K)

    # Lane-align K (147 -> 256) and add one zero conv row on top (halo for tile 0;
    # its activation is masked inside the kernel).
    pat = jnp.pad(pat, ((0, 0), (1, 0), (0, 0), (0, kp - K)))

    tile_ph = _pick_tile_ph(PH, pool_row_tile_target)
    n_tiles = PH // tile_ph
    n_conv_rows = 2 * tile_ph + 1
    tiles = [lax.slice_in_dim(pat, 2 * tile_ph * t, 2 * tile_ph * t + n_conv_rows, axis=1)
             for t in range(n_tiles)]
    pat = jnp.stack(tiles, axis=1)                            # (B, NT, CR, 2*PW, KP)
    return pat, (OH, OW, PH, PW, tile_ph, n_tiles, n_conv_rows)


# ----------------------------- parameters ------------------------------------

def init_params(key, in_ch=3, feat_ch=64):
    k1, k2, k3 = jax.random.split(key, 3)
    fan_in = in_ch * 7 * 7
    conv1_w = jax.random.normal(k1, (feat_ch, in_ch, 7, 7),
                                jnp.float32) * jnp.sqrt(2.0 / fan_in)
    # BatchNorm (inference mode): gamma=1, beta=0, synthetic running stats.
    bn_gamma = jnp.ones((feat_ch,), jnp.float32)
    bn_beta = jnp.zeros((feat_ch,), jnp.float32)
    bn_mean = 0.1 * jax.random.normal(k2, (feat_ch,), jnp.float32)
    bn_var = jax.nn.softplus(jax.random.normal(k3, (feat_ch,), jnp.float32)) + 0.5
    scale = bn_gamma / jnp.sqrt(bn_var + BN_EPS)
    shift = bn_beta - bn_mean * scale

    K = in_ch * 7 * 7
    kp = _round_up(max(K, LANES), LANES)                      # 147 -> 256
    cp = _round_up(max(feat_ch, LANES), LANES)                # 64  -> 128
    w_bf16 = conv1_w.astype(jnp.bfloat16)                     # same rounding as reference
    w_gemm = w_bf16.reshape(feat_ch, K).T                     # (K, feat_ch)
    w_gemm_pad = jnp.zeros((kp, cp), jnp.bfloat16).at[:K, :feat_ch].set(w_gemm)
    scale_pad = jnp.zeros((1, cp), jnp.float32).at[0, :feat_ch].set(scale)
    shift_pad = jnp.zeros((1, cp), jnp.float32).at[0, :feat_ch].set(shift)

    return dict(conv1_w=conv1_w, bn_scale=scale, bn_shift=shift,
                conv1_w_gemm_pad=w_gemm_pad,
                bn_scale_pad=scale_pad, bn_shift_pad=shift_pad)


# ----------------------------- forward ---------------------------------------

def resnet_base_forward(x_nchw, params):
    x = jnp.transpose(x_nchw, (0, 2, 3, 1)).astype(jnp.bfloat16)   # NCHW -> NHWC, bf16
    B = x.shape[0]
    w_pad = params['conv1_w_gemm_pad']                              # (KP, CP) bf16
    scale = params['bn_scale_pad']                                  # (1, CP) f32
    shift = params['bn_shift_pad']                                  # (1, CP) f32
    kp, cp = w_pad.shape
    oc = params['conv1_w'].shape[0]

    patches, dims = _build_patch_tiles(x, kp)
    OH, OW, PH, PW, tile_ph, n_tiles, n_conv_rows = dims

    kernel = _make_stem_kernel(n_conv_rows, tile_ph, PW, cp)
    out = pl.pallas_call(
        kernel,
        out_shape=jax.ShapeDtypeStruct((B, PH, PW, cp), jnp.float32),
        grid=(B, n_tiles),
        in_specs=[
            pl.BlockSpec((None, None, n_conv_rows, 2 * PW, kp),
                         lambda b, t: (b, t, 0, 0, 0)),
            pl.BlockSpec((kp, cp), lambda b, t: (0, 0)),
            pl.BlockSpec((1, cp), lambda b, t: (0, 0)),
            pl.BlockSpec((1, cp), lambda b, t: (0, 0)),
        ],
        out_specs=pl.BlockSpec((None, tile_ph, PW, cp), lambda b, t: (b, t, 0, 0)),
        compiler_params=pltpu.CompilerParams(
            dimension_semantics=("parallel", "parallel"),
            vmem_limit_bytes=32 * 1024 * 1024),
    )(patches, w_pad, scale, shift)

    out = out[..., :oc]                                 # drop channel padding (128 -> 64)
    return jnp.transpose(out, (0, 3, 1, 2))             # NHWC -> NCHW


# ----------------------------- pure-JAX reference -----------------------------

def reference_forward(x_nchw, params):
    # Uses the same bf16 input/weight rounding as the Pallas path; accumulation in f32.
    xq = x_nchw.astype(jnp.bfloat16).astype(jnp.float32)
    wq = params['conv1_w'].astype(jnp.bfloat16).astype(jnp.float32)
    y = lax.conv_general_dilated(xq, wq, (2, 2), ((3, 3), (3, 3)),
                                 dimension_numbers=('NCHW', 'OIHW', 'NCHW'),
                                 precision=lax.Precision.HIGHEST)
    scale = params['bn_scale'].reshape(1, -1, 1, 1)
    shift = params['bn_shift'].reshape(1, -1, 1, 1)
    y = jnp.maximum(y * scale + shift, 0.0)
    y = lax.reduce_window(y, -jnp.inf, lax.max, (1, 1, 3, 3), (1, 1, 2, 2),
                          ((0, 0), (0, 0), (1, 1), (1, 1)))
    return y


# ----------------------------- main -------------------------------------------

if __name__ == "__main__":
    key = jax.random.PRNGKey(0)
    kx, kparam = jax.random.split(key)
    x = jax.random.normal(kx, (2, 3, 16, 16), jnp.float32)   # NCHW, like PyTorch
    params = init_params(kparam)

    out = resnet_base_forward(x, params)
    out = jax.block_until_ready(out)

    ref = reference_forward(x, params)
    assert out.shape == ref.shape == (2, 64, 4, 4), (out.shape, ref.shape)
    assert jnp.allclose(out, ref, rtol=1e-3, atol=1e-3), \
        float(jnp.max(jnp.abs(out - ref)))

    print("KERNEL_OK")
</pallas_src>

<mosaic_0001>
module attributes {stable_mosaic.version = 11 : i64} {
  func.func @kernel(%arg0: i32, %arg1: i32, %arg2: memref<1x1x9x8x256xbf16, #tpu.memory_space<vmem>>, %arg3: memref<256x128xbf16, #tpu.memory_space<vmem>>, %arg4: memref<1x128xf32, #tpu.memory_space<vmem>>, %arg5: memref<1x128xf32, #tpu.memory_space<vmem>>, %arg6: memref<1x4x4x128xf32, #tpu.memory_space<vmem>>) attributes {dimension_semantics = [#tpu.dimension_semantics<parallel>, #tpu.dimension_semantics<parallel>], iteration_bounds = array<i64: 2, 1>, scalar_prefetch = 0 : i64, scratch_operands = 0 : i64, tpu.core_type = #tpu.core_type<tc>, window_params = [{transform_indices = @transform_0, window_bounds = array<i64: 1, 1, 9, 8, 256>}, {pipeline_mode = #tpu.pipeline_mode<synchronous>, transform_indices = @transform_1, window_bounds = array<i64: 256, 128>}, {pipeline_mode = #tpu.pipeline_mode<synchronous>, transform_indices = @transform_2, window_bounds = array<i64: 1, 128>}, {pipeline_mode = #tpu.pipeline_mode<synchronous>, transform_indices = @transform_3, window_bounds = array<i64: 1, 128>}, {transform_indices = @transform_4, window_bounds = array<i64: 1, 4, 4, 128>}]} {
    %c0 = arith.constant 0 : index
    %c0_0 = arith.constant 0 : index
    %0 = vector.load %arg3[%c0, %c0_0] : memref<256x128xbf16, #tpu.memory_space<vmem>>, vector<256x128xbf16>
    %c0_1 = arith.constant 0 : index
    %c0_2 = arith.constant 0 : index
    %1 = vector.load %arg4[%c0_1, %c0_2] : memref<1x128xf32, #tpu.memory_space<vmem>>, vector<1x128xf32>
    %c0_3 = arith.constant 0 : index
    %c0_4 = arith.constant 0 : index
    %2 = vector.load %arg5[%c0_3, %c0_4] : memref<1x128xf32, #tpu.memory_space<vmem>>, vector<1x128xf32>
    %c0_5 = arith.constant 0 : index
    %c0_6 = arith.constant 0 : index
    %c0_7 = arith.constant 0 : index
    %c0_8 = arith.constant 0 : index
    %c0_9 = arith.constant 0 : index
    %3 = vector.load %arg2[%c0_5, %c0_6, %c0_7, %c0_8, %c0_9] : memref<1x1x9x8x256xbf16, #tpu.memory_space<vmem>>, vector<1x1x1x8x256xbf16>
    %4 = vector.shape_cast %3 : vector<1x1x1x8x256xbf16> to vector<8x256xbf16>
    %cst = arith.constant dense<0.000000e+00> : vector<8x128xf32>
    %5 = tpu.matmul %4, %0, %cst {dimension_numbers = #tpu.dot_dimension_numbers<[1], [0], [0], [1], [0, 0, 1, 1], [], []>} : vector<8x256xbf16>, vector<256x128xbf16>, vector<8x128xf32> -> vector<8x128xf32>
    %6 = vector.broadcast %1 : vector<1x128xf32> to vector<8x128xf32>
    %7 = arith.mulf %5, %6 : vector<8x128xf32>
    %8 = vector.broadcast %2 : vector<1x128xf32> to vector<8x128xf32>
    %9 = arith.addf %7, %8 : vector<8x128xf32>
    %cst_10 = arith.constant 0.000000e+00 : f32
    %10 = vector.broadcast %cst_10 : f32 to vector<8x128xf32>
    %11 = arith.maximumf %9, %10 : vector<8x128xf32>
    %c0_i32 = arith.constant 0 : i32
    %12 = arith.cmpi sgt, %arg1, %c0_i32 : i32
    %cst_11 = arith.constant 1.000000e+00 : f32
    %cst_12 = arith.constant 0.000000e+00 : f32
    %13 = arith.select %12, %cst_11, %cst_12 : f32
    %14 = vector.broadcast %13 : f32 to vector<8x128xf32>
    %15 = arith.mulf %11, %14 : vector<8x128xf32>
    %c0_13 = arith.constant 0 : index
    %c0_14 = arith.constant 0 : index
    %c1 = arith.constant 1 : index
    %c0_15 = arith.constant 0 : index
    %c0_16 = arith.constant 0 : index
    %16 = vector.load %arg2[%c0_13, %c0_14, %c1, %c0_15, %c0_16] : memref<1x1x9x8x256xbf16, #tpu.memory_space<vmem>>, vector<1x1x1x8x256xbf16>
    %17 = vector.shape_cast %16 : vector<1x1x1x8x256xbf16> to vector<8x256xbf16>
    %cst_17 = arith.constant dense<0.000000e+00> : vector<8x128xf32>
    %18 = tpu.matmul %17, %0, %cst_17 {dimension_numbers = #tpu.dot_dimension_numbers<[1], [0], [0], [1], [0, 0, 1, 1], [], []>} : vector<8x256xbf16>, vector<256x128xbf16>, vector<8x128xf32> -> vector<8x128xf32>
    %19 = vector.broadcast %1 : vector<1x128xf32> to vector<8x128xf32>
    %20 = arith.mulf %18, %19 : vector<8x128xf32>
    %21 = vector.broadcast %2 : vector<1x128xf32> to vector<8x128xf32>
    %22 = arith.addf %20, %21 : vector<8x128xf32>
    %cst_18 = arith.constant 0.000000e+00 : f32
    %23 = vector.broadcast %cst_18 : f32 to vector<8x128xf32>
    %24 = arith.maximumf %22, %23 : vector<8x128xf32>
    %c0_19 = arith.constant 0 : index
    %c0_20 = arith.constant 0 : index
    %c2 = arith.constant 2 : index
    %c0_21 = arith.constant 0 : index
    %c0_22 = arith.constant 0 : index
    %25 = vector.load %arg2[%c0_19, %c0_20, %c2, %c0_21, %c0_22] : memref<1x1x9x8x256xbf16, #tpu.memory_space<vmem>>, vector<1x1x1x8x256xbf16>
    %26 = vector.shape_cast %25 : vector<1x1x1x8x256xbf16> to vector<8x256xbf16>
    %cst_23 = arith.constant dense<0.000000e+00> : vector<8x128xf32>
    %27 = tpu.matmul %26, %0, %cst_23 {dimension_numbers = #tpu.dot_dimension_numbers<[1], [0], [0], [1], [0, 0, 1, 1], [], []>} : vector<8x256xbf16>, vector<256x128xbf16>, vector<8x128xf32> -> vector<8x128xf32>
    %28 = vector.broadcast %1 : vector<1x128xf32> to vector<8x128xf32>
    %29 = arith.mulf %27, %28 : vector<8x128xf32>
    %30 = vector.broadcast %2 : vector<1x128xf32> to vector<8x128xf32>
    %31 = arith.addf %29, %30 : vector<8x128xf32>
    %cst_24 = arith.constant 0.000000e+00 : f32
    %32 = vector.broadcast %cst_24 : f32 to vector<8x128xf32>
    %33 = arith.maximumf %31, %32 : vector<8x128xf32>
    %c0_25 = arith.constant 0 : index
    %c0_26 = arith.constant 0 : index
    %c3 = arith.constant 3 : index
    %c0_27 = arith.constant 0 : index
    %c0_28 = arith.constant 0 : index
    %34 = vector.load %arg2[%c0_25, %c0_26, %c3, %c0_27, %c0_28] : memref<1x1x9x8x256xbf16, #tpu.memory_space<vmem>>, vector<1x1x1x8x256xbf16>
    %35 = vector.shape_cast %34 : vector<1x1x1x8x256xbf16> to vector<8x256xbf16>
    %cst_29 = arith.constant dense<0.000000e+00> : vector<8x128xf32>
    %36 = tpu.matmul %35, %0, %cst_29 {dimension_numbers = #tpu.dot_dimension_numbers<[1], [0], [0], [1], [0, 0, 1, 1], [], []>} : vector<8x256xbf16>, vector<256x128xbf16>, vector<8x128xf32> -> vector<8x128xf32>
    %37 = vector.broadcast %1 : vector<1x128xf32> to vector<8x128xf32>
    %38 = arith.mulf %36, %37 : vector<8x128xf32>
    %39 = vector.broadcast %2 : vector<1x128xf32> to vector<8x128xf32>
    %40 = arith.addf %38, %39 : vector<8x128xf32>
    %cst_30 = arith.constant 0.000000e+00 : f32
    %41 = vector.broadcast %cst_30 : f32 to vector<8x128xf32>
    %42 = arith.maximumf %40, %41 : vector<8x128xf32>
    %c0_31 = arith.constant 0 : index
    %c0_32 = arith.constant 0 : index
    %c4 = arith.constant 4 : index
    %c0_33 = arith.constant 0 : index
    %c0_34 = arith.constant 0 : index
    %43 = vector.load %arg2[%c0_31, %c0_32, %c4, %c0_33, %c0_34] : memref<1x1x9x8x256xbf16, #tpu.memory_space<vmem>>, vector<1x1x1x8x256xbf16>
    %44 = vector.shape_cast %43 : vector<1x1x1x8x256xbf16> to vector<8x256xbf16>
    %cst_35 = arith.constant dense<0.000000e+00> : vector<8x128xf32>
    %45 = tpu.matmul %44, %0, %cst_35 {dimension_numbers = #tpu.dot_dimension_numbers<[1], [0], [0], [1], [0, 0, 1, 1], [], []>} : vector<8x256xbf16>, vector<256x128xbf16>, vector<8x128xf32> -> vector<8x128xf32>
    %46 = vector.broadcast %1 : vector<1x128xf32> to vector<8x128xf32>
    %47 = arith.mulf %45, %46 : vector<8x128xf32>
    %48 = vector.broadcast %2 : vector<1x128xf32> to vector<8x128xf32>
    %49 = arith.addf %47, %48 : vector<8x128xf32>
    %cst_36 = arith.constant 0.000000e+00 : f32
    %50 = vector.broadcast %cst_36 : f32 to vector<8x128xf32>
    %51 = arith.maximumf %49, %50 : vector<8x128xf32>
    %c0_37 = arith.constant 0 : index
    %c0_38 = arith.constant 0 : index
    %c5 = arith.constant 5 : index
    %c0_39 = arith.constant 0 : index
    %c0_40 = arith.constant 0 : index
    %52 = vector.load %arg2[%c0_37, %c0_38, %c5, %c0_39, %c0_40] : memref<1x1x9x8x256xbf16, #tpu.memory_space<vmem>>, vector<1x1x1x8x256xbf16>
    %53 = vector.shape_cast %52 : vector<1x1x1x8x256xbf16> to vector<8x256xbf16>
    %cst_41 = arith.constant dense<0.000000e+00> : vector<8x128xf32>
    %54 = tpu.matmul %53, %0, %cst_41 {dimension_numbers = #tpu.dot_dimension_numbers<[1], [0], [0], [1], [0, 0, 1, 1], [], []>} : vector<8x256xbf16>, vector<256x128xbf16>, vector<8x128xf32> -> vector<8x128xf32>
    %55 = vector.broadcast %1 : vector<1x128xf32> to vector<8x128xf32>
    %56 = arith.mulf %54, %55 : vector<8x128xf32>
    %57 = vector.broadcast %2 : vector<1x128xf32> to vector<8x128xf32>
    %58 = arith.addf %56, %57 : vector<8x128xf32>
    %cst_42 = arith.constant 0.000000e+00 : f32
    %59 = vector.broadcast %cst_42 : f32 to vector<8x128xf32>
    %60 = arith.maximumf %58, %59 : vector<8x128xf32>
    %c0_43 = arith.constant 0 : index
    %c0_44 = arith.constant 0 : index
    %c6 = arith.constant 6 : index
    %c0_45 = arith.constant 0 : index
    %c0_46 = arith.constant 0 : index
    %61 = vector.load %arg2[%c0_43, %c0_44, %c6, %c0_45, %c0_46] : memref<1x1x9x8x256xbf16, #tpu.memory_space<vmem>>, vector<1x1x1x8x256xbf16>
    %62 = vector.shape_cast %61 : vector<1x1x1x8x256xbf16> to vector<8x256xbf16>
    %cst_47 = arith.constant dense<0.000000e+00> : vector<8x128xf32>
    %63 = tpu.matmul %62, %0, %cst_47 {dimension_numbers = #tpu.dot_dimension_numbers<[1], [0], [0], [1], [0, 0, 1, 1], [], []>} : vector<8x256xbf16>, vector<256x128xbf16>, vector<8x128xf32> -> vector<8x128xf32>
    %64 = vector.broadcast %1 : vector<1x128xf32> to vector<8x128xf32>
    %65 = arith.mulf %63, %64 : vector<8x128xf32>
    %66 = vector.broadcast %2 : vector<1x128xf32> to vector<8x128xf32>
    %67 = arith.addf %65, %66 : vector<8x128xf32>
    %cst_48 = arith.constant 0.000000e+00 : f32
    %68 = vector.broadcast %cst_48 : f32 to vector<8x128xf32>
    %69 = arith.maximumf %67, %68 : vector<8x128xf32>
    %c0_49 = arith.constant 0 : index
    %c0_50 = arith.constant 0 : index
    %c7 = arith.constant 7 : index
    %c0_51 = arith.constant 0 : index
    %c0_52 = arith.constant 0 : index
    %70 = vector.load %arg2[%c0_49, %c0_50, %c7, %c0_51, %c0_52] : memref<1x1x9x8x256xbf16, #tpu.memory_space<vmem>>, vector<1x1x1x8x256xbf16>
    %71 = vector.shape_cast %70 : vector<1x1x1x8x256xbf16> to vector<8x256xbf16>
    %cst_53 = arith.constant dense<0.000000e+00> : vector<8x128xf32>
    %72 = tpu.matmul %71, %0, %cst_53 {dimension_numbers = #tpu.dot_dimension_numbers<[1], [0], [0], [1], [0, 0, 1, 1], [], []>} : vector<8x256xbf16>, vector<256x128xbf16>, vector<8x128xf32> -> vector<8x128xf32>
    %73 = vector.broadcast %1 : vector<1x128xf32> to vector<8x128xf32>
    %74 = arith.mulf %72, %73 : vector<8x128xf32>
    %75 = vector.broadcast %2 : vector<1x128xf32> to vector<8x128xf32>
    %76 = arith.addf %74, %75 : vector<8x128xf32>
    %cst_54 = arith.constant 0.000000e+00 : f32
    %77 = vector.broadcast %cst_54 : f32 to vector<8x128xf32>
    %78 = arith.maximumf %76, %77 : vector<8x128xf32>
    %c0_55 = arith.constant 0 : index
    %c0_56 = arith.constant 0 : index
    %c8 = arith.constant 8 : index
    %c0_57 = arith.constant 0 : index
    %c0_58 = arith.constant 0 : index
    %79 = vector.load %arg2[%c0_55, %c0_56, %c8, %c0_57, %c0_58] : memref<1x1x9x8x256xbf16, #tpu.memory_space<vmem>>, vector<1x1x1x8x256xbf16>
    %80 = vector.shape_cast %79 : vector<1x1x1x8x256xbf16> to vector<8x256xbf16>
    %cst_59 = arith.constant dense<0.000000e+00> : vector<8x128xf32>
    %81 = tpu.matmul %80, %0, %cst_59 {dimension_numbers = #tpu.dot_dimension_numbers<[1], [0], [0], [1], [0, 0, 1, 1], [], []>} : vector<8x256xbf16>, vector<256x128xbf16>, vector<8x128xf32> -> vector<8x128xf32>
    %82 = vector.broadcast %1 : vector<1x128xf32> to vector<8x128xf32>
    %83 = arith.mulf %81, %82 : vector<8x128xf32>
    %84 = vector.broadcast %2 : vector<1x128xf32> to vector<8x128xf32>
    %85 = arith.addf %83, %84 : vector<8x128xf32>
    %cst_60 = arith.constant 0.000000e+00 : f32
    %86 = vector.broadcast %cst_60 : f32 to vector<8x128xf32>
    %87 = arith.maximumf %85, %86 : vector<8x128xf32>
    %88 = tpu.iota {dimensions = array<i32: 0>} : vector<4x128xi32>
    %89 = arith.maximumf %15, %24 : vector<8x128xf32>
    %90 = arith.maximumf %89, %33 : vector<8x128xf32>
    %91 = vector.extract_strided_slice %90 {offsets = [0, 0], sizes = [4, 128], strides = [1, 1]} : vector<8x128xf32> to vector<4x128xf32>
    %92 = vector.extract_strided_slice %90 {offsets = [4, 0], sizes = [4, 128], strides = [1, 1]} : vector<8x128xf32> to vector<4x128xf32>
    %c0_i32_61 = arith.constant 0 : i32
    %93 = vector.broadcast %c0_i32_61 : i32 to vector<4x128xi32>
    %94 = arith.cmpi eq, %88, %93 : vector<4x128xi32>
    %95 = vector.extract_strided_slice %90 {offsets = [3, 0], sizes = [4, 128], strides = [1, 1]} : vector<8x128xf32> to vector<4x128xf32>
    %cst_62 = arith.constant 0.000000e+00 : f32
    %96 = vector.broadcast %cst_62 : f32 to vector<4x128xf32>
    %97 = arith.select %94, %96, %95 : vector<4x128xi1>, vector<4x128xf32>
    %98 = arith.maximumf %97, %91 : vector<4x128xf32>
    %99 = arith.maximumf %98, %92 : vector<4x128xf32>
    %c0_63 = arith.constant 0 : index
    %c0_64 = arith.constant 0 : index
    %c0_65 = arith.constant 0 : index
    %c0_66 = arith.constant 0 : index
    %100 = vector.load %arg6[%c0_63, %c0_64, %c0_65, %c0_66] : memref<1x4x4x128xf32, #tpu.memory_space<vmem>>, vector<1x1x4x128xf32>
    %101 = vector.shape_cast %100 : vector<1x1x4x128xf32> to vector<4x128xf32>
    %102 = vector.shape_cast %99 : vector<4x128xf32> to vector<1x1x4x128xf32>
    tpu.vector_store %arg6[%c0_63, %c0_64, %c0_65, %c0_66], %102 {strides = array<i32>} : memref<1x4x4x128xf32, #tpu.memory_space<vmem>>, vector<1x1x4x128xf32>,
    %103 = arith.maximumf %33, %42 : vector<8x128xf32>
    %104 = arith.maximumf %103, %51 : vector<8x128xf32>
    %105 = vector.extract_strided_slice %104 {offsets = [0, 0], sizes = [4, 128], strides = [1, 1]} : vector<8x128xf32> to vector<4x128xf32>
    %106 = vector.extract_strided_slice %104 {offsets = [4, 0], sizes = [4, 128], strides = [1, 1]} : vector<8x128xf32> to vector<4x128xf32>
    %c0_i32_67 = arith.constant 0 : i32
    %107 = vector.broadcast %c0_i32_67 : i32 to vector<4x128xi32>
    %108 = arith.cmpi eq, %88, %107 : vector<4x128xi32>
    %109 = vector.extract_strided_slice %104 {offsets = [3, 0], sizes = [4, 128], strides = [1, 1]} : vector<8x128xf32> to vector<4x128xf32>
    %cst_68 = arith.constant 0.000000e+00 : f32
    %110 = vector.broadcast %cst_68 : f32 to vector<4x128xf32>
    %111 = arith.select %108, %110, %109 : vector<4x128xi1>, vector<4x128xf32>
    %112 = arith.maximumf %111, %105 : vector<4x128xf32>
    %113 = arith.maximumf %112, %106 : vector<4x128xf32>
    %c0_69 = arith.constant 0 : index
    %c1_70 = arith.constant 1 : index
    %c0_71 = arith.constant 0 : index
    %c0_72 = arith.constant 0 : index
    %114 = vector.load %arg6[%c0_69, %c1_70, %c0_71, %c0_72] : memref<1x4x4x128xf32, #tpu.memory_space<vmem>>, vector<1x1x4x128xf32>
    %115 = vector.shape_cast %114 : vector<1x1x4x128xf32> to vector<4x128xf32>
    %116 = vector.shape_cast %113 : vector<4x128xf32> to vector<1x1x4x128xf32>
    tpu.vector_store %arg6[%c0_69, %c1_70, %c0_71, %c0_72], %116 {strides = array<i32>} : memref<1x4x4x128xf32, #tpu.memory_space<vmem>>, vector<1x1x4x128xf32>,
    %117 = arith.maximumf %51, %60 : vector<8x128xf32>
    %118 = arith.maximumf %117, %69 : vector<8x128xf32>
    %119 = vector.extract_strided_slice %118 {offsets = [0, 0], sizes = [4, 128], strides = [1, 1]} : vector<8x128xf32> to vector<4x128xf32>
    %120 = vector.extract_strided_slice %118 {offsets = [4, 0], sizes = [4, 128], strides = [1, 1]} : vector<8x128xf32> to vector<4x128xf32>
    %c0_i32_73 = arith.constant 0 : i32
    %121 = vector.broadcast %c0_i32_73 : i32 to vector<4x128xi32>
    %122 = arith.cmpi eq, %88, %121 : vector<4x128xi32>
    %123 = vector.extract_strided_slice %118 {offsets = [3, 0], sizes = [4, 128], strides = [1, 1]} : vector<8x128xf32> to vector<4x128xf32>
    %cst_74 = arith.constant 0.000000e+00 : f32
    %124 = vector.broadcast %cst_74 : f32 to vector<4x128xf32>
    %125 = arith.select %122, %124, %123 : vector<4x128xi1>, vector<4x128xf32>
    %126 = arith.maximumf %125, %119 : vector<4x128xf32>
    %127 = arith.maximumf %126, %120 : vector<4x128xf32>
    %c0_75 = arith.constant 0 : index
    %c2_76 = arith.constant 2 : index
    %c0_77 = arith.constant 0 : index
    %c0_78 = arith.constant 0 : index
    %128 = vector.load %arg6[%c0_75, %c2_76, %c0_77, %c0_78] : memref<1x4x4x128xf32, #tpu.memory_space<vmem>>, vector<1x1x4x128xf32>
    %129 = vector.shape_cast %128 : vector<1x1x4x128xf32> to vector<4x128xf32>
    %130 = vector.shape_cast %127 : vector<4x128xf32> to vector<1x1x4x128xf32>
    tpu.vector_store %arg6[%c0_75, %c2_76, %c0_77, %c0_78], %130 {strides = array<i32>} : memref<1x4x4x128xf32, #tpu.memory_space<vmem>>, vector<1x1x4x128xf32>,
    %131 = arith.maximumf %69, %78 : vector<8x128xf32>
    %132 = arith.maximumf %131, %87 : vector<8x128xf32>
    %133 = vector.extract_strided_slice %132 {offsets = [0, 0], sizes = [4, 128], strides = [1, 1]} : vector<8x128xf32> to vector<4x128xf32>
    %134 = vector.extract_strided_slice %132 {offsets = [4, 0], sizes = [4, 128], strides = [1, 1]} : vector<8x128xf32> to vector<4x128xf32>
    %c0_i32_79 = arith.constant 0 : i32
    %135 = vector.broadcast %c0_i32_79 : i32 to vector<4x128xi32>
    %136 = arith.cmpi eq, %88, %135 : vector<4x128xi32>
    %137 = vector.extract_strided_slice %132 {offsets = [3, 0], sizes = [4, 128], strides = [1, 1]} : vector<8x128xf32> to vector<4x128xf32>
    %cst_80 = arith.constant 0.000000e+00 : f32
    %138 = vector.broadcast %cst_80 : f32 to vector<4x128xf32>
    %139 = arith.select %136, %138, %137 : vector<4x128xi1>, vector<4x128xf32>
    %140 = arith.maximumf %139, %133 : vector<4x128xf32>
    %141 = arith.maximumf %140, %134 : vector<4x128xf32>
    %c0_81 = arith.constant 0 : index
    %c3_82 = arith.constant 3 : index
    %c0_83 = arith.constant 0 : index
    %c0_84 = arith.constant 0 : index
    %142 = vector.load %arg6[%c0_81, %c3_82, %c0_83, %c0_84] : memref<1x4x4x128xf32, #tpu.memory_space<vmem>>, vector<1x1x4x128xf32>
    %143 = vector.shape_cast %142 : vector<1x1x4x128xf32> to vector<4x128xf32>
    %144 = vector.shape_cast %141 : vector<4x128xf32> to vector<1x1x4x128xf32>
    tpu.vector_store %arg6[%c0_81, %c3_82, %c0_83, %c0_84], %144 {strides = array<i32>} : memref<1x4x4x128xf32, #tpu.memory_space<vmem>>, vector<1x1x4x128xf32>,
    return
  }
  func.func @transform_0(%arg0: i32, %arg1: i32) -> (i32, i32, i32, i32, i32) {
    %c0_i32 = arith.constant 0 : i32
    %c0_i32_0 = arith.constant 0 : i32
    %c0_i32_1 = arith.constant 0 : i32
    %c0_i32_2 = arith.constant 0 : i32
    return %arg0, %arg1, %c0_i32, %c0_i32_0, %c0_i32_1 : i32, i32, i32, i32, i32
  }
  func.func @transform_1(%arg0: i32, %arg1: i32) -> (i32, i32) {
    %c0_i32 = arith.constant 0 : i32
    %c0_i32_0 = arith.constant 0 : i32
    %c0_i32_1 = arith.constant 0 : i32
    return %c0_i32, %c0_i32_0 : i32, i32
  }
  func.func @transform_2(%arg0: i32, %arg1: i32) -> (i32, i32) {
    %c0_i32 = arith.constant 0 : i32
    %c0_i32_0 = arith.constant 0 : i32
    %c0_i32_1 = arith.constant 0 : i32
    return %c0_i32, %c0_i32_0 : i32, i32
  }
  func.func @transform_3(%arg0: i32, %arg1: i32) -> (i32, i32) {
    %c0_i32 = arith.constant 0 : i32
    %c0_i32_0 = arith.constant 0 : i32
    %c0_i32_1 = arith.constant 0 : i32
    return %c0_i32, %c0_i32_0 : i32, i32
  }
  func.func @transform_4(%arg0: i32, %arg1: i32) -> (i32, i32, i32, i32) {
    %c0_i32 = arith.constant 0 : i32
    %c0_i32_0 = arith.constant 0 : i32
    %c0_i32_1 = arith.constant 0 : i32
    return %arg0, %arg1, %c0_i32, %c0_i32_0 : i32, i32, i32, i32
  }
}

</mosaic_0001>

<bundles_post_ra>
// kernel: tpu_custom_call.1
= control target key start
LH: loop header
LB: loop body
LE: loop exit
PB: predicated region body
PF: predicated region fallthrough
CT: control target
= control target key end

     0   :  { %9 = vsyncpa [#allocation3], 0  ;;  %s2030_s0 = inlined_call_operand.hbm [shape: bf16[2,1,9,8,256], index: 0, kind: input, shape index: {}]   ;;  %s2031_s1 = inlined_call_operand.hbm [shape: bf16[256,128], index: 1, kind: input, shape index: {}]   ;;  %s2032_s2 = inlined_call_operand.vmem [shape: f32[1,128], index: 2, kind: input, shape index: {}]   ;;  %s2033_s3 = inlined_call_operand.vmem [shape: f32[1,128], index: 3, kind: input, shape index: {}]   ;;  %s2034_s4 = inlined_call_operand.hbm [shape: f32[2,4,4,128], index: 4, kind: output, shape index: {}]  }
   0x1   :  { %11 = vsyncpa [#allocation3 + $0x1], 0 }
   0x2   :  { %12 = vsyncpa [#allocation6], 0 }
   0x3   :  { %13 = vsyncpa [#allocation4], 0 }
   0x4   :  { %15 = vsyncpa [#allocation4 + $0x1], 0  ;;  %s1583_s15 = smov 0   ;;  %s1585_s16 = smov 0  }
   0x5   :  { %s1587_s17 = smov 0   ;;  %s1589_s18 = smov 0  }
   0x6   :  { %s1591_s19 = smov 0   ;;  %s1593_s20 = smov 0  }
   0x7 LB: > { %s1027_s21 = sadd.s32 4294967295, %s1547_s20   ;;  %s1028_s22 = sadd.s32 4294967294, %s1547_s20   ;;  %s1547_s20 = sphi %s1593_s20, %s21_s20   ;;  %s1543_s19 = sphi %s1591_s19, %s2057_s19   ;;  %s1539_s18 = sphi %s1589_s18, %s2056_s18   ;;  %s1535_s17 = sphi %s1587_s17, %s2055_s17   ;;  %s1531_s16 = sphi %s1585_s16, %s2054_s16   ;;  %s1527_s15 = sphi %s1583_s15, %s2053_s15  }
   0x8   : > { %p55_p0 = scmp.ne.s32.totalorder %s1531_s16, %s1527_s15  ;;  %p1617_p1 = scmp.eq.s32.totalorder %s1027_s21, 0 }
   0x9   : > { %p1621_p2 = scmp.eq.s32.totalorder %s1027_s21, 1  ;;  %p150_p3 = scmp.eq.s32.totalorder %s1028_s22, 1 }
   0xa   : > { %s2039_s23 = scalar_select %p1617_p1, 1, 0 }
   0xb   : > { %s2040_s24 = scalar_select %p1621_p2, 1, 0 }
   0xc   : > { %p1627_p4 = por %p1617_p1, %p55_p0  ;;  %p1029_p5 = scmp.ge.s32.totalorder %s1547_s20, 1 }
   0xd   : > { %p1632_p6 = por %p150_p3, %p55_p0  ;;  %p157_p7 = scmp.lt.s32.totalorder %s1547_s20, 3 }
   0xe   : > { %s2041_s25 = scalar_select %p1627_p4, 1, 0 }
   0xf   : > { %s2042_s26 = scalar_select %p1632_p6, 1, 0 }
  0x10   : > { %p1637_p8 = pnand %p1029_p5, %p157_p7  ;;  %s1549_s28 = smov [#allocation5]  }
  0x11   : > { %s169_s29 = sshll.u32 %s1549_s28, 4  ;;  %s33_s5 = sadd.s32 1, %s1543_s19  ;;  %s170_s29 = int_to_ptr.vmem [resolvable:$true] %s169_s29 }
  0x12   : > { %s2043_s27 = scalar_select %p1637_p8, 1, 0 }
  0x13   : > { %p1298_p9 = pneg %p1637_p8  ;;  %s1403_s8 = scalar_lea.hbm %s2031_s1, 2048 }
  0x14   : > { %p1404_p12 = scmp.ne.s32.totalorder %s2031_s1, %s1403_s8  ;;  %p1410_p5 = scmp.lt.u32.totalorder %s1403_s8, %s2031_s1 }
  0x15   : > { %p1646_p11 = pnand %p1298_p9, %p1617_p1 }
  0x17   : > { %p1405_p13 = pneg %p1646_p11 }
  0x19   : > { %p1406_p0 = pnand %p1405_p13, %p1404_p12 }
  0x1b   : > { %p1407_p3 = pneg %p1406_p0 }
  0x1d   : > { %p1412_p7 = pnand %p1410_p5, %p1407_p3 }
  0x1f   : > { %1415 = shalt.err (!%p1412_p7)
}
  0x20   : > { %s1416_s13 = scalar_lea.vmem %s170_s29, 2048  ;;  %p1424_p1 = scmp.lt.s32.totalorder %s170_s29, %s170_s29 }
  0x21   : > { %p1417_p9 = scmp.ne.s32.totalorder %s170_s29, %s1416_s13  ;;  %p1425_p4 = scmp.lt.s32.totalorder %s1416_s13, %s1416_s13 }
  0x23   : > { %p1419_p10 = pnand %p1417_p9, %p1405_p13  ;;  %p1426_p8 = por %p1425_p4, %p1424_p1 }
  0x25   : > { %p1420_p6 = pneg %p1419_p10 }
  0x27   : > { %p1427_p2 = pnand %p1426_p8, %p1420_p6 }
  0x29   : > { %1430 = shalt.err (!%p1427_p2)
}
  0x2a   : > { %s1550_s14 = smov 64   ;;  %s1551_s21 = smov 4  }
  0x2b   : > { %1301 = dma.hbm_to_vmem [thread:$0]  (!%p1646_p11), %s2031_s1, 2048, %s170_s29, [#allocation6], %s1550_s14, %s1550_s14, %s1551_s21  }
  0x2c   : > { %p35_p1 = scmp.ge.s32.totalorder %s33_s5, 2  ;;  %s42_s6 = sadd.s32 1, %s1535_s17 }
  0x2d   : > { %p49_p2 = scmp.ne.s32.totalorder %s1535_s17, %s1531_s16  ;;  %p50_p4 = scmp.eq.s32.totalorder %s1547_s20, 0 }
  0x2e   : > { %s2059_s5 = smov (%p35_p1, %s33_s5), 0  ;;  %p2045_p8 = scmp.ne.s32.totalorder %s2040_s24, 0 }
  0x2f   : > { %p51_p6 = por %p50_p4, %p49_p2  ;;  %s37_s8 = ssub.s32 %s1543_s19, %s2059_s5 }
  0x30   : > { %p1675_p10 = por %p2045_p8, %p49_p2  ;;  %p1311_p12 = scmp.lt.s32.totalorder %s1547_s20, 2 }
  0x31   : > { %p40_p13 = scmp.eq.s32.totalorder %s37_s8, 0  ;;  %s189_s30 = sand.u32 1, %s1535_s17  }
  0x32   : > { %s1287_s9 = smul.u32 72, %s189_s30  ;;  %p1687_p11 = pnand %p1311_p12, %p51_p6 }
  0x33   : > { %s1684_s10 = scalar_select %p40_p13, %s1535_s17, %s42_s6  }
  0x34   : > { %s1288_s29 = smul.u32 1152, %s1543_s19  ;;  %s193_s11 = scalar_lea.vmem [#allocation2], %s1287_s9 }
  0x35   : > { %s202_s12 = sshll.u32 %s193_s11, 4  ;;  %s1698_s22 = scalar_lea.sflag [#allocation3], %s189_s30  ;;  %s1696_s12 = int_to_ptr.vmem [resolvable:$true] %s202_s12 }
  0x36   : > { %s1694_s21 = scalar_lea.hbm %s2030_s0, %s1288_s29  ;;  %p1433_p3 = pneg %p1687_p11 }
  0x37   : > { %s1431_s28 = scalar_lea.hbm %s1694_s21, 1152  ;;  %s1436_s9 = scalar_lea.hbm %s2030_s0, 2304 }
  0x38   : > { %p1432_p0 = scmp.ne.s32.totalorder %s1694_s21, %s1431_s28  ;;  %p1437_p9 = scmp.lt.u32.totalorder %s1694_s21, %s2030_s0 }
  0x39   : > { %p1438_p1 = scmp.lt.u32.totalorder %s1436_s9, %s1431_s28  ;;  %p1440_p4 = scmp.lt.u32.totalorder %s1431_s28, %s1694_s21 }
  0x3a   : > { %p1434_p5 = pnand %p1433_p3, %p1432_p0 }
  0x3b   : > { %p1439_p2 = por %p1438_p1, %p1437_p9 }
  0x3c   : > { %p1435_p7 = pneg %p1434_p5 }
  0x3d   : > { %p1441_p6 = por %p1440_p4, %p1439_p2 }
  0x3f   : > { %p1442_p8 = pnand %p1441_p6, %p1435_p7 }
  0x41   : > { %1445 = shalt.err (!%p1442_p8)
}
  0x42   : > { %s1446_s30 = scalar_lea.vmem %s1696_s12, 1152  ;;  %s1552_s14 = smov [#allocation2]  }
  0x43   : > { %p1447_p12 = scmp.ne.s32.totalorder %s1696_s12, %s1446_s30  ;;  %s1451_s24 = sshll.u32 %s1552_s14, 4  ;;  %s1452_s24 = int_to_ptr.vmem [resolvable:$false] %s1451_s24 }
  0x44   : > { %s1453_s6 = scalar_lea.vmem %s1452_s24, 2304  ;;  %p1454_p5 = scmp.lt.s32.totalorder %s1696_s12, %s1452_s24 }
  0x45   : > { %p1449_p13 = pnand %p1447_p12, %p1433_p3  ;;  %p1455_p9 = scmp.lt.s32.totalorder %s1453_s6, %s1446_s30 }
  0x47   : > { %p1450_p0 = pneg %p1449_p13  ;;  %p1456_p1 = por %p1455_p9, %p1454_p5 }
  0x49   : > { %p1457_p2 = pnand %p1456_p1, %p1450_p0 }
  0x4b   : > { %1460 = shalt.err (!%p1457_p2)
}
  0x4c   : > { %s1553_s28 = smov 128   ;;  %s1554_s8 = smov 8  }
  0x4d   : > { %1305 = dma.hbm_to_vmem [thread:$0]  (!%p1687_p11), %s1694_s21, 1152, %s1696_s12, %s1698_s22, %s1553_s28, %s1553_s28, %s1554_s8  }
  0x4e   : > { %p2048_p3 = scmp.ne.s32.totalorder %s2043_s27, 0 }
  0x4f   : > { %s1729_s9 = sand.u32 (!%p2048_p3), 1, %s1531_s16   ;;  %p2049_p7 = scmp.ne.s32.totalorder (!%p2048_p3), %s2041_s25, 0 }
  0x50   : > { %214 = sbr.rel (%p2048_p3) target bundleno = 497 (0x1f1), region = 36  ;;  %s217_s11 = scalar_lea.sflag (!%p2048_p3), [#allocation3], %s1729_s9 }
  0x51   : > { %s1289_s29 = smul.u32 (!%p2048_p3), 72, %s1729_s9 }
  0x53   : > { %s1733_s30 = scalar_lea.vmem (!%p2048_p3), [#allocation2], %s1289_s29 }
  0x57   : > { %1514 = dma.done.wait (%p2049_p7), %s217_s11, 1152  }
  0x58   : > { %1516 = vsyncadd (%p2049_p7), %s217_s11, 4294966144  ;;  %p2050_p11 = scmp.ne.s32.totalorder %s2039_s23, 0 }
  0x5a   : > { %1518 = dma.done.wait (%p2050_p11), [#allocation6], 2048  }
  0x5b   : > { %1520 = vsyncadd (%p2050_p11), [#allocation6], 4294965248  ;;  %v1743_v0 = vld [vmem:[#allocation5 + $0x40] sm:$0xff]   ;;  %v1749_v2 = vld [vmem:[#allocation5 + $0x48] sm:$0xff]   ;;  %s1035_s13 = sshll.u32 %s1729_s9, 4  ;;  %s1088_s22 = sshll.u32 %s1539_s18, 8 }
  0x5c   : > { %v1745_v1 = vld [vmem:[#allocation5] sm:$0xff]   ;;  %1089 = vmatprep.subr.bf16.mxu0 %v1743_v0  ;;  %1111 = vmatprep.subr.bf16.mxu1 %v1743_v0  ;;  %v1753_v3 = vld [vmem:[#allocation5 + $0x8] sm:$0xff]   ;;  %v1757_v4 = vld [vmem:[#allocation5 + $0x50] sm:$0xff]   ;;  %s1952_s21 = scalar_lea.vmem [#allocation7], %s1035_s13  ;;  %s1978_s28 = scalar_lea.hbm %s2034_s4, %s1088_s22 }
  0x5d   : > { %1090 = vmatpush3.bf16.msra.mxu0 %v1745_v1  ;;  %1112 = vmatpush3.bf16.msra.mxu1 %v1745_v1  ;;  %v1761_v5 = vld [vmem:[#allocation5 + $0x10] sm:$0xff]   ;;  %v1765_v6 = vld [vmem:[#allocation5 + $0x58] sm:$0xff]   ;;  %v1773_v8 = vld [vmem:[#allocation5 + $0x60] sm:$0xff]   ;;  %s930_s14 = sshll.u32 %s1952_s21, 4  ;;  %s915_s8 = scalar_lea.sflag [#allocation4], %s1729_s9  ;;  %s1980_s14 = int_to_ptr.vmem [resolvable:$true] %s930_s14 }
  0x5e   : > { %1091 = vmatprep.subr.bf16.mxu0 %v1749_v2  ;;  %1113 = vmatprep.subr.bf16.mxu1 %v1749_v2  ;;  %v1769_v7 = vld [vmem:[#allocation5 + $0x18] sm:$0xff]   ;;  %v1777_v9 = vld [vmem:[#allocation5 + $0x20] sm:$0xff]   ;;  %v1781_v10 = vld [vmem:[#allocation5 + $0x68] sm:$0xff]   ;;  %s1461_s18 = scalar_lea.vmem %s1980_s14, 256  ;;  %s1555_s29 = smov [#allocation7]  }
  0x5f   : > { %v285_v11 = vld [vmem:[%s1733_s30] sm:$0xff]  ;;  %v1056_v12 = vld [vmem:[%s1733_s30 + $0x8] sm:$0xff]  ;;  %v1787_v15 = vld [vmem:[#allocation5 + $0x28] sm:$0xff]   ;;  %p1462_p4 = scmp.ne.s32.totalorder %s1980_s14, %s1461_s18  ;;  %s1465_s11 = sshll.u32 %s1555_s29, 4  ;;  %s1466_s11 = int_to_ptr.vmem [resolvable:$false] %s1465_s11 }
  0x60   : > { %v1037_v13 = vcombine.high %v285_v11, %v285_v11  ;;  %v1058_v14 = vcombine.high %v1056_v12, %v1056_v12  ;;  %v1791_v16 = vld [vmem:[#allocation5 + $0x70] sm:$0xff]   ;;  %v1799_v18 = vld [vmem:[#allocation5 + $0x78] sm:$0xff]   ;;  %v1036_v20 = vcombine.low %v285_v11, %v285_v11  ;;  %v1057_v21 = vcombine.low %v1056_v12, %v1056_v12  ;;  %v1059_v22 = vld [vmem:[%s1733_s30 + $0x10] sm:$0xff]  ;;  %p1468_p12 = scmp.lt.s32.totalorder %s1980_s14, %s1466_s11 }
  0x61   : > { %1092 = vmatpush3.bf16.msra.mxu0 %v1753_v3  ;;  %1114 = vmatpush3.bf16.msra.mxu1 %v1753_v3  ;;  %v1795_v17 = vld [vmem:[#allocation5 + $0x30] sm:$0xff]   ;;  %v1803_v19 = vld [vmem:[#allocation5 + $0x38] sm:$0xff]   ;;  %v1061_v24 = vcombine.high %v1059_v22, %v1059_v22  ;;  %v1060_v26 = vcombine.low %v1059_v22, %v1059_v22  ;;  %v1071_v34 = vld [vmem:[%s1733_s30 + $0x30] sm:$0xff]  ;;  %p1463_p6 = pnand %p1462_p4, %p1675_p10 }
  0x62   : > { %1093 = vmatprep.subr.bf16.mxu0 %v1757_v4  ;;  %1115 = vmatprep.subr.bf16.mxu1 %v1757_v4  ;;  %v1062_v23 = vld [vmem:[%s1733_s30 + $0x18] sm:$0xff]  ;;  %v1065_v28 = vld [vmem:[%s1733_s30 + $0x20] sm:$0xff]  ;;  %v1068_v29 = vld [vmem:[%s1733_s30 + $0x28] sm:$0xff]  ;;  %v1073_v36 = vcombine.high %v1071_v34, %v1071_v34  ;;  %v1072_v39 = vcombine.low %v1071_v34, %v1071_v34 }
  0x63   : > { %421 = vmatprep.mubr.bf16.mxu0 %v1037_v13  ;;  %489 = vmatprep.mubr.bf16.mxu1 %v1058_v14  ;;  %v1064_v25 = vcombine.high %v1062_v23, %v1062_v23  ;;  %v1063_v27 = vcombine.low %v1062_v23, %v1062_v23  ;;  %v1067_v30 = vcombine.high %v1065_v28, %v1065_v28  ;;  %v1074_v35 = vld [vmem:[%s1733_s30 + $0x38] sm:$0xff]  ;;  %v1077_v38 = vld [vmem:[%s1733_s30 + $0x40] sm:$0xff]  ;;  %p1464_p8 = pneg %p1463_p6  ;;  %s1467_s30 = scalar_lea.vmem %s1466_s11, 512 }
  0x64   : > { %v1070_v31 = vcombine.high %v1068_v29, %v1068_v29  ;;  %v1066_v32 = vcombine.low %v1065_v28, %v1065_v28  ;;  %v1069_v33 = vcombine.low %v1068_v29, %v1068_v29  ;;  %v1076_v37 = vcombine.high %v1074_v35, %v1074_v35  ;;  %v1931_v45 = vld [vmem:[%s2032_s2] ss:$0 sm:$0xff]  ;;  %p1469_p13 = scmp.lt.s32.totalorder %s1467_s30, %s1461_s18 }
  0x65   : > { %1094 = vmatpush3.bf16.msra.mxu0 %v1761_v5  ;;  %1116 = vmatpush3.bf16.msra.mxu1 %v1761_v5  ;;  %v1075_v40 = vcombine.low %v1074_v35, %v1074_v35  ;;  %v1079_v41 = vcombine.high %v1077_v38, %v1077_v38  ;;  %v1078_v42 = vcombine.low %v1077_v38, %v1077_v38  ;;  %v1936_v52 = vld [vmem:[%s2033_s3] ss:$0 sm:$0xff] }
  0x66   : > { %1095 = vmatprep.subr.bf16.mxu0 %v1765_v6  ;;  %1117 = vmatprep.subr.bf16.mxu1 %v1765_v6  ;;  %p1470_p0 = por %p1469_p13, %p1468_p12 }
  0x68   : > { %p1471_p5 = pnand %p1470_p0, %p1464_p8 }
  0x69   : > { %1096 = vmatpush3.bf16.msra.mxu0 %v1769_v7  ;;  %1118 = vmatpush3.bf16.msra.mxu1 %v1769_v7 }
  0x6a   : > { %1097 = vmatprep.subr.bf16.mxu0 %v1773_v8  ;;  %1119 = vmatprep.subr.bf16.mxu1 %v1773_v8 }
  0x6d   : > { %1098 = vmatpush3.bf16.msra.mxu0 %v1777_v9  ;;  %1120 = vmatpush3.bf16.msra.mxu1 %v1777_v9 }
  0x6e   : > { %1099 = vmatprep.subr.bf16.mxu0 %v1781_v10  ;;  %1121 = vmatprep.subr.bf16.mxu1 %v1781_v10 }
  0x71   : > { %1100 = vmatpush3.bf16.msra.mxu0 %v1787_v15  ;;  %1122 = vmatpush3.bf16.msra.mxu1 %v1787_v15 }
  0x72   : > { %1101 = vmatprep.subr.bf16.mxu0 %v1791_v16  ;;  %1123 = vmatprep.subr.bf16.mxu1 %v1791_v16 }
  0x75   : > { %1102 = vmatpush3.bf16.msra.mxu0 %v1795_v17  ;;  %1124 = vmatpush3.bf16.msra.mxu1 %v1795_v17 }
  0x76   : > { %1103 = vmatprep.subr.bf16.mxu0 %v1799_v18  ;;  %1125 = vmatprep.subr.bf16.mxu1 %v1799_v18 }
  0x79   : > { %1104 = vmatpush3.bf16.msra.mxu0 %v1803_v19  ;;  %1126 = vmatpush3.bf16.msra.mxu1 %v1803_v19 }
  0x7a   : > { %1133 = vmatprep.subr.bf16.mxu0 %v1743_v0  ;;  %1155 = vmatprep.subr.bf16.mxu1 %v1743_v0 }
  0x7c   : > { %422 = vmatmul.mubr.bf16.vlgmr.msra.gmra.mrb[0].mxu0 %v1036_v20  ;;  %490 = vmatmul.mubr.bf16.vlgmr.msra.gmra.mrb[0].mxu1 %v1057_v21 }
  0x7d   : > { %1134 = vmatpush3.bf16.msra.mxu0 %v1745_v1  ;;  %1156 = vmatpush3.bf16.msra.mxu1 %v1745_v1 }
  0x7e   : > { %1135 = vmatprep.subr.bf16.mxu0 %v1749_v2  ;;  %1157 = vmatprep.subr.bf16.mxu1 %v1749_v2 }
  0x7f   : > { %541 = vmatprep.mubr.bf16.mxu0 %v1061_v24  ;;  %593 = vmatprep.mubr.bf16.mxu1 %v1064_v25 }
  0x81   : > { %1136 = vmatpush3.bf16.msra.mxu0 %v1753_v3  ;;  %1158 = vmatpush3.bf16.msra.mxu1 %v1753_v3 }
  0x82   : > { %1137 = vmatprep.subr.bf16.mxu0 %v1757_v4  ;;  %1159 = vmatprep.subr.bf16.mxu1 %v1757_v4 }
  0x85   : > { %1138 = vmatpush3.bf16.msra.mxu0 %v1761_v5  ;;  %1160 = vmatpush3.bf16.msra.mxu1 %v1761_v5 }
  0x86   : > { %1139 = vmatprep.subr.bf16.mxu0 %v1765_v6  ;;  %1161 = vmatprep.subr.bf16.mxu1 %v1765_v6 }
  0x89   : > { %1140 = vmatpush3.bf16.msra.mxu0 %v1769_v7  ;;  %1162 = vmatpush3.bf16.msra.mxu1 %v1769_v7 }
  0x8a   : > { %1141 = vmatprep.subr.bf16.mxu0 %v1773_v8  ;;  %1163 = vmatprep.subr.bf16.mxu1 %v1773_v8 }
  0x8d   : > { %1142 = vmatpush3.bf16.msra.mxu0 %v1777_v9  ;;  %1164 = vmatpush3.bf16.msra.mxu1 %v1777_v9 }
  0x8e   : > { %1143 = vmatprep.subr.bf16.mxu0 %v1781_v10  ;;  %1165 = vmatprep.subr.bf16.mxu1 %v1781_v10 }
  0x91   : > { %1144 = vmatpush3.bf16.msra.mxu0 %v1787_v15  ;;  %1166 = vmatpush3.bf16.msra.mxu1 %v1787_v15 }
  0x92   : > { %1145 = vmatprep.subr.bf16.mxu0 %v1791_v16  ;;  %1167 = vmatprep.subr.bf16.mxu1 %v1791_v16 }
  0x95   : > { %1146 = vmatpush3.bf16.msra.mxu0 %v1795_v17  ;;  %1168 = vmatpush3.bf16.msra.mxu1 %v1795_v17 }
  0x96   : > { %1147 = vmatprep.subr.bf16.mxu0 %v1799_v18  ;;  %1169 = vmatprep.subr.bf16.mxu1 %v1799_v18 }
  0x99   : > { %1148 = vmatpush3.bf16.msra.mxu0 %v1803_v19  ;;  %1170 = vmatpush3.bf16.msra.mxu1 %v1803_v19 }
  0x9a   : > { %1177 = vmatprep.subr.bf16.mxu0 %v1743_v0  ;;  %1199 = vmatprep.subr.bf16.mxu1 %v1743_v0 }
  0x9c   : > { %542 = vmatmul.mubr.bf16.vlgmr.msra.gmra.mrb[4].mxu0 %v1060_v26  ;;  %594 = vmatmul.mubr.bf16.vlgmr.msra.gmra.mrb[4].mxu1 %v1063_v27 }
  0x9d   : > { %1178 = vmatpush3.bf16.msra.mxu0 %v1745_v1  ;;  %1200 = vmatpush3.bf16.msra.mxu1 %v1745_v1 }
  0x9e   : > { %1179 = vmatprep.subr.bf16.mxu0 %v1749_v2  ;;  %1201 = vmatprep.subr.bf16.mxu1 %v1749_v2 }
  0x9f   : > { %645 = vmatprep.mubr.bf16.mxu0 %v1067_v30  ;;  %697 = vmatprep.mubr.bf16.mxu1 %v1070_v31 }
  0xa1   : > { %1180 = vmatpush3.bf16.msra.mxu0 %v1753_v3  ;;  %1202 = vmatpush3.bf16.msra.mxu1 %v1753_v3 }
  0xa2   : > { %1181 = vmatprep.subr.bf16.mxu0 %v1757_v4  ;;  %1203 = vmatprep.subr.bf16.mxu1 %v1757_v4 }
  0xa5   : > { %1182 = vmatpush3.bf16.msra.mxu0 %v1761_v5  ;;  %1204 = vmatpush3.bf16.msra.mxu1 %v1761_v5 }
  0xa6   : > { %1183 = vmatprep.subr.bf16.mxu0 %v1765_v6  ;;  %1205 = vmatprep.subr.bf16.mxu1 %v1765_v6 }
  0xa9   : > { %1184 = vmatpush3.bf16.msra.mxu0 %v1769_v7  ;;  %1206 = vmatpush3.bf16.msra.mxu1 %v1769_v7 }
  0xaa   : > { %1185 = vmatprep.subr.bf16.mxu0 %v1773_v8  ;;  %1207 = vmatprep.subr.bf16.mxu1 %v1773_v8 }
  0xad   : > { %1186 = vmatpush3.bf16.msra.mxu0 %v1777_v9  ;;  %1208 = vmatpush3.bf16.msra.mxu1 %v1777_v9 }
  0xae   : > { %1187 = vmatprep.subr.bf16.mxu0 %v1781_v10  ;;  %1209 = vmatprep.subr.bf16.mxu1 %v1781_v10 }
  0xb1   : > { %1188 = vmatpush3.bf16.msra.mxu0 %v1787_v15  ;;  %1210 = vmatpush3.bf16.msra.mxu1 %v1787_v15 }
  0xb2   : > { %1189 = vmatprep.subr.bf16.mxu0 %v1791_v16  ;;  %1211 = vmatprep.subr.bf16.mxu1 %v1791_v16 }
  0xb5   : > { %1190 = vmatpush3.bf16.msra.mxu0 %v1795_v17  ;;  %1212 = vmatpush3.bf16.msra.mxu1 %v1795_v17 }
  0xb6   : > { %1191 = vmatprep.subr.bf16.mxu0 %v1799_v18  ;;  %1213 = vmatprep.subr.bf16.mxu1 %v1799_v18 }
  0xb9   : > { %1192 = vmatpush3.bf16.msra.mxu0 %v1803_v19  ;;  %1214 = vmatpush3.bf16.msra.mxu1 %v1803_v19 }
  0xba   : > { %1221 = vmatprep.subr.bf16.mxu0 %v1743_v0  ;;  %1243 = vmatprep.subr.bf16.mxu1 %v1743_v0 }
  0xbc   : > { %646 = vmatmul.mubr.bf16.vlgmr.msra.gmra.mrb[8].mxu0 %v1066_v32  ;;  %698 = vmatmul.mubr.bf16.vlgmr.msra.gmra.mrb[8].mxu1 %v1069_v33 }
  0xbd   : > { %1222 = vmatpush3.bf16.msra.mxu0 %v1745_v1  ;;  %1244 = vmatpush3.bf16.msra.mxu1 %v1745_v1 }
  0xbe   : > { %1223 = vmatprep.subr.bf16.mxu0 %v1749_v2  ;;  %1245 = vmatprep.subr.bf16.mxu1 %v1749_v2 }
  0xbf   : > { %749 = vmatprep.mubr.bf16.mxu0 %v1073_v36  ;;  %801 = vmatprep.mubr.bf16.mxu1 %v1076_v37 }
  0xc1   : > { %1224 = vmatpush3.bf16.msra.mxu0 %v1753_v3  ;;  %1246 = vmatpush3.bf16.msra.mxu1 %v1753_v3 }
  0xc2   : > { %1225 = vmatprep.subr.bf16.mxu0 %v1757_v4  ;;  %1247 = vmatprep.subr.bf16.mxu1 %v1757_v4 }
  0xc5   : > { %1226 = vmatpush3.bf16.msra.mxu0 %v1761_v5  ;;  %1248 = vmatpush3.bf16.msra.mxu1 %v1761_v5 }
  0xc6   : > { %1227 = vmatprep.subr.bf16.mxu0 %v1765_v6  ;;  %1249 = vmatprep.subr.bf16.mxu1 %v1765_v6 }
  0xc9   : > { %1228 = vmatpush3.bf16.msra.mxu0 %v1769_v7  ;;  %1250 = vmatpush3.bf16.msra.mxu1 %v1769_v7 }
  0xca   : > { %1229 = vmatprep.subr.bf16.mxu0 %v1773_v8  ;;  %1251 = vmatprep.subr.bf16.mxu1 %v1773_v8 }
  0xcd   : > { %1230 = vmatpush3.bf16.msra.mxu0 %v1777_v9  ;;  %1252 = vmatpush3.bf16.msra.mxu1 %v1777_v9 }
  0xce   : > { %1231 = vmatprep.subr.bf16.mxu0 %v1781_v10  ;;  %1253 = vmatprep.subr.bf16.mxu1 %v1781_v10 }
  0xd1   : > { %1232 = vmatpush3.bf16.msra.mxu0 %v1787_v15  ;;  %1254 = vmatpush3.bf16.msra.mxu1 %v1787_v15 }
  0xd2   : > { %1233 = vmatprep.subr.bf16.mxu0 %v1791_v16  ;;  %1255 = vmatprep.subr.bf16.mxu1 %v1791_v16 }
  0xd5   : > { %1234 = vmatpush3.bf16.msra.mxu0 %v1795_v17  ;;  %1256 = vmatpush3.bf16.msra.mxu1 %v1795_v17 }
  0xd6   : > { %1235 = vmatprep.subr.bf16.mxu0 %v1799_v18  ;;  %1257 = vmatprep.subr.bf16.mxu1 %v1799_v18 }
  0xd9   : > { %1236 = vmatpush3.bf16.msra.mxu0 %v1803_v19  ;;  %1258 = vmatpush3.bf16.msra.mxu1 %v1803_v19 }
  0xda   : > { %1265 = vmatprep.subr.bf16.mxu0 %v1743_v0 }
  0xdc   : > { %750 = vmatmul.mubr.bf16.vlgmr.msra.gmra.mrb[12].mxu0 %v1072_v39  ;;  %802 = vmatmul.mubr.bf16.vlgmr.msra.gmra.mrb[12].mxu1 %v1075_v40 }
  0xdd   : > { %1266 = vmatpush3.bf16.msra.mxu0 %v1745_v1  ;;  %853 = vmatprep.mubr.bf16.mxu0 %v1079_v41 }
  0xde   : > { %1267 = vmatprep.subr.bf16.mxu0 %v1749_v2 }
  0xe1   : > { %1268 = vmatpush3.bf16.msra.mxu0 %v1753_v3 }
  0xe2   : > { %1269 = vmatprep.subr.bf16.mxu0 %v1757_v4 }
  0xe5   : > { %1270 = vmatpush3.bf16.msra.mxu0 %v1761_v5 }
  0xe6   : > { %1271 = vmatprep.subr.bf16.mxu0 %v1765_v6 }
  0xe9   : > { %1272 = vmatpush3.bf16.msra.mxu0 %v1769_v7  ;;  %v864_v7 = vlaneseq }
  0xea   : > { %1273 = vmatprep.subr.bf16.mxu0 %v1773_v8 }
  0xeb   : > { %v1946_v14 = vshrl.u32 %v864_v7, 7 }
  0xed   : > { %1274 = vmatpush3.bf16.msra.mxu0 %v1777_v9  ;;  %vm868_vm0 = vcmp.eq.s32.totalorder %v1946_v14, 0 }
  0xee   : > { %1275 = vmatprep.subr.bf16.mxu0 %v1781_v10 }
  0xf1   : > { %1276 = vmatpush3.bf16.msra.mxu0 %v1787_v15 }
  0xf2   : > { %1277 = vmatprep.subr.bf16.mxu0 %v1791_v16 }
  0xf5   : > { %1278 = vmatpush3.bf16.msra.mxu0 %v1795_v17 }
  0xf6   : > { %1279 = vmatprep.subr.bf16.mxu0 %v1799_v18 }
  0xf9   : > { %1280 = vmatpush3.bf16.msra.mxu0 %v1803_v19 }
  0xfc   : > { %854 = vmatmul.mubr.bf16.vlgmr.msra.gmra.mrb[16].mxu0 %v1078_v42 }
 0x14f   : > { %v1105_v43 = vpop.f32.mrb[0].mxu0  ;;  %v1127_v44 = vpop.f32.mrb[0].mxu1 }
 0x150   : > { %v1106_v46 = vpop.f32.mrb[1].mxu0  ;;  %v1128_v47 = vpop.f32.mrb[1].mxu1 }
 0x151   : > { %v1107_v48 = vadd.f32 %v1106_v46, %v1105_v43  ;;  %v1108_v49 = vpop.f32.mrb[2].mxu0  ;;  %v1129_v50 = vadd.f32 %v1128_v47, %v1127_v44  ;;  %v1130_v51 = vpop.f32.mrb[2].mxu1 }
 0x152   : > { %v1109_v53 = vpop.f32.mrb[3].mxu0  ;;  %v1131_v54 = vpop.f32.mrb[3].mxu1 }
 0x153   : > { %v435_v55 = vmul.f32 %v1107_v48, %v1931_v45  ;;  %v497_v56 = vmul.f32 %v1129_v50, %v1931_v45 }
 0x155   : > { %v442_v57 = vadd.f32 %v1936_v52, %v435_v55  ;;  %v498_v58 = vadd.f32 %v1936_v52, %v497_v56 }
 0x157   : > { %v443_v59 = vmax.f32 %v442_v57, 0.0  ;;  %v499_v60 = vmax.f32 %v498_v58, 0.0 }
 0x159   : > { %v447_v61 = vmul.f32 0.0, %v443_v59 }
 0x15b   : > { %v866_v62 = vmax.f32 %v447_v61, %v499_v60 }
 0x16f   : > { %v1149_v63 = vpop.f32.mrb[4].mxu0  ;;  %v1171_v0 = vpop.f32.mrb[4].mxu1 }
 0x170   : > { %v1150_v1 = vpop.f32.mrb[5].mxu0  ;;  %v1172_v2 = vpop.f32.mrb[5].mxu1 }
 0x171   : > { %v1151_v3 = vadd.f32 %v1150_v1, %v1149_v63  ;;  %v1173_v4 = vadd.f32 %v1172_v2, %v1171_v0  ;;  %v1152_v5 = vpop.f32.mrb[6].mxu0  ;;  %v1174_v6 = vpop.f32.mrb[6].mxu1 }
 0x172   : > { %v1153_v8 = vpop.f32.mrb[7].mxu0  ;;  %v1175_v9 = vpop.f32.mrb[7].mxu1 }
 0x173   : > { %v549_v10 = vmul.f32 %v1151_v3, %v1931_v45  ;;  %v601_v11 = vmul.f32 %v1173_v4, %v1931_v45 }
 0x175   : > { %v550_v12 = vadd.f32 %v1936_v52, %v549_v10  ;;  %v602_v13 = vadd.f32 %v1936_v52, %v601_v11 }
 0x177   : > { %v551_v15 = vmax.f32 %v550_v12, 0.0  ;;  %v603_v16 = vmax.f32 %v602_v13, 0.0 }
 0x179   : > { %v867_v17 = vmax.f32 %v866_v62, %v551_v15  ;;  %v878_v18 = vmax.f32 %v551_v15, %v603_v16 }
 0x17b   : > { %v870_v19 = vrot.slane %v867_v17, 3  ;;  %v874_v22 = vrot.slane %v867_v17, 4 }
 0x17d   : > { %v872_v20 = vsel %vm868_vm0, 0.0, %v870_v19 }
 0x17e   : > { %v873_v21 = vmax.f32 %v872_v20, %v867_v17 }
 0x180   : > { %v876_v23 = vmax.f32 %v873_v21, %v874_v22 }
 0x182   : > { %877 = vst [vmem:[%s1952_s21] sm:$0xf] %v876_v23 }
 0x18f   : > { %v1193_v24 = vpop.f32.mrb[8].mxu0  ;;  %v1215_v25 = vpop.f32.mrb[8].mxu1 }
 0x190   : > { %v1194_v26 = vpop.f32.mrb[9].mxu0  ;;  %v1216_v27 = vpop.f32.mrb[9].mxu1 }
 0x191   : > { %v1195_v28 = vadd.f32 %v1194_v26, %v1193_v24  ;;  %v1217_v29 = vadd.f32 %v1216_v27, %v1215_v25  ;;  %v1196_v30 = vpop.f32.mrb[10].mxu0  ;;  %v1218_v31 = vpop.f32.mrb[10].mxu1 }
 0x192   : > { %v1197_v32 = vpop.f32.mrb[11].mxu0  ;;  %v1219_v33 = vpop.f32.mrb[11].mxu1 }
 0x193   : > { %v653_v34 = vmul.f32 %v1195_v28, %v1931_v45  ;;  %v705_v35 = vmul.f32 %v1217_v29, %v1931_v45 }
 0x195   : > { %v654_v36 = vadd.f32 %v1936_v52, %v653_v34  ;;  %v706_v37 = vadd.f32 %v1936_v52, %v705_v35 }
 0x197   : > { %v655_v38 = vmax.f32 %v654_v36, 0.0  ;;  %v707_v39 = vmax.f32 %v706_v37, 0.0 }
 0x199   : > { %v879_v40 = vmax.f32 %v878_v18, %v655_v38  ;;  %v890_v41 = vmax.f32 %v655_v38, %v707_v39 }
 0x19b   : > { %v881_v42 = vrot.slane %v879_v40, 3  ;;  %v885_v46 = vrot.slane %v879_v40, 4 }
 0x19d   : > { %v883_v43 = vsel %vm868_vm0, 0.0, %v881_v42 }
 0x19e   : > { %v884_v44 = vmax.f32 %v883_v43, %v879_v40 }
 0x1a0   : > { %v887_v47 = vmax.f32 %v884_v44, %v885_v46 }
 0x1a2   : > { %1080 = vst [vmem:[%s1952_s21 + $0x4] sm:$0xf] %v887_v47 }
 0x1af   : > { %v1237_v48 = vpop.f32.mrb[12].mxu0  ;;  %v1259_v49 = vpop.f32.mrb[12].mxu1 }
 0x1b0   : > { %v1238_v50 = vpop.f32.mrb[13].mxu0  ;;  %v1260_v51 = vpop.f32.mrb[13].mxu1 }
 0x1b1   : > { %v1239_v53 = vadd.f32 %v1238_v50, %v1237_v48  ;;  %v1261_v54 = vadd.f32 %v1260_v51, %v1259_v49  ;;  %v1240_v55 = vpop.f32.mrb[14].mxu0  ;;  %v1262_v56 = vpop.f32.mrb[14].mxu1 }
 0x1b2   : > { %v1241_v57 = vpop.f32.mrb[15].mxu0  ;;  %v1263_v58 = vpop.f32.mrb[15].mxu1 }
 0x1b3   : > { %v757_v59 = vmul.f32 %v1239_v53, %v1931_v45  ;;  %v809_v60 = vmul.f32 %v1261_v54, %v1931_v45 }
 0x1b5   : > { %v758_v61 = vadd.f32 %v1936_v52, %v757_v59  ;;  %v810_v62 = vadd.f32 %v1936_v52, %v809_v60 }
 0x1b7   : > { %v759_v63 = vmax.f32 %v758_v61, 0.0  ;;  %v811_v0 = vmax.f32 %v810_v62, 0.0 }
 0x1b9   : > { %v891_v1 = vmax.f32 %v890_v41, %v759_v63  ;;  %v902_v2 = vmax.f32 %v759_v63, %v811_v0 }
 0x1bb   : > { %v893_v3 = vrot.slane %v891_v1, 3  ;;  %v897_v6 = vrot.slane %v891_v1, 4 }
 0x1bd   : > { %v895_v4 = vsel %vm868_vm0, 0.0, %v893_v3 }
 0x1be   : > { %v896_v5 = vmax.f32 %v895_v4, %v891_v1 }
 0x1c0   : > { %v899_v7 = vmax.f32 %v896_v5, %v897_v6 }
 0x1c2   : > { %1081 = vst [vmem:[%s1952_s21 + $0x8] sm:$0xf] %v899_v7 }
 0x1cf   : > { %v1281_v8 = vpop.f32.mrb[16].mxu0 }
 0x1d0   : > { %v1282_v9 = vpop.f32.mrb[17].mxu0 }
 0x1d1   : > { %v1283_v10 = vadd.f32 %v1282_v9, %v1281_v8  ;;  %v1284_v11 = vpop.f32.mrb[18].mxu0 }
 0x1d2   : > { %v1285_v12 = vpop.f32.mrb[19].mxu0 }
 0x1d3   : > { %v861_v13 = vmul.f32 %v1283_v10, %v1931_v45 }
 0x1d5   : > { %v862_v15 = vadd.f32 %v1936_v52, %v861_v13 }
 0x1d7   : > { %v863_v16 = vmax.f32 %v862_v15, 0.0 }
 0x1d9   : > { %v903_v17 = vmax.f32 %v902_v2, %v863_v16 }
 0x1db   : > { %v905_v18 = vrot.slane %v903_v17, 3  ;;  %v909_v21 = vrot.slane %v903_v17, 4 }
 0x1dd   : > { %v907_v19 = vsel %vm868_vm0, 0.0, %v905_v18 }
 0x1de   : > { %v908_v20 = vmax.f32 %v907_v19, %v903_v17 }
 0x1e0   : > { %v911_v45 = vmax.f32 %v908_v20, %v909_v21 }
 0x1e2   : > { %1082 = vst [vmem:[%s1952_s21 + $0xc] sm:$0xf] %v911_v45 }
 0x1e3   : > { %1474 = shalt.err (!%p1471_p5)
}
 0x1e4   : > { %s1475_s23 = scalar_lea.hbm %s1978_s28, 256  ;;  %s1479_s12 = scalar_lea.hbm %s2034_s4, 512 }
 0x1e5   : > { %p1476_p9 = scmp.ne.s32.totalorder %s1978_s28, %s1475_s23  ;;  %p1480_p3 = scmp.lt.u32.totalorder %s1978_s28, %s2034_s4 }
 0x1e6   : > { %p1481_p7 = scmp.lt.u32.totalorder %s1479_s12, %s1475_s23  ;;  %p1483_p4 = scmp.lt.u32.totalorder %s1475_s23, %s1978_s28 }
 0x1e7   : > { %p1477_p1 = pnand %p1476_p9, %p1675_p10 }
 0x1e8   : > { %p1482_p11 = por %p1481_p7, %p1480_p3 }
 0x1e9   : > { %p1478_p2 = pneg %p1477_p1 }
 0x1ea   : > { %p1484_p6 = por %p1483_p4, %p1482_p11 }
 0x1ec   : > { %p1485_p8 = pnand %p1484_p6, %p1478_p2 }
 0x1ee   : > { %1488 = shalt.err (!%p1485_p8)
}
 0x1ef   : > { %s1556_s22 = smov 64   ;;  %s1557_s24 = smov 4  }
 0x1f0   : > { %1296 = dma.vmem_to_hbm [thread:$0]  (%p1675_p10), %s1980_s14, 256, %s1978_s28, %s915_s8, %s1556_s22, %s1556_s22, %s1557_s24  }
 0x1f1 PF: > { %s945_s6 = sand.u32 1, %s1527_s15   ;;  %p2051_p12 = scmp.ne.s32.totalorder %s2042_s26, 0 }
 0x1f2   : > { %p2052_p13 = scmp.ge.s32.totalorder %s1547_s20, 2  ;;  %s946_s18 = scalar_lea.sflag [#allocation4], %s945_s6 }
 0x1f4   : > { %p1307_p0 = pnand %p2052_p13, %p2051_p12 }
 0x1f6   : > { %1522 = dma.done.wait (!%p1307_p0), %s946_s18, 256  }
 0x1f7   : > { %1524 = vsyncadd (!%p1307_p0), %s946_s18, 4294967040  ;;  %s21_s20 = sadd.s32 1, %s1547_s20   ;;  %s2053_s15 = smov %s1531_s16 }
 0x1f8   : > { %p18_p5 = scmp.ge.s32.totalorder %s21_s20, 4   ;;  %s2054_s16 = smov %s1535_s17 }
 0x1f9   : > { %s2055_s17 = smov %s1684_s10  ;;  %s2056_s18 = smov %s1543_s19 }
 0x1fa   : > { %s2057_s19 = smov %s2059_s5  ;;  %20 = sbr.rel (!%p18_p5) target bundleno = 7 (0x7), region = 96 }
 0x201   :  { %951 = vsyncpa [#allocation3], 1 }
 0x202   :  { %953 = vsyncpa [#allocation3 + $0x1], 1 }
 0x203   :  { %954 = vsyncpa [#allocation6], 1 }
 0x204   :  { %955 = vsyncpa [#allocation4], 1 }
 0x205   :  { %957 = vsyncpa [#allocation4 + $0x1], 1 }

</bundles_post_ra>
